<compile_context>
chip_gen: v6e
topology: v6e:2x2x1
jax: 0.10.0
libtpu: 0.0.40
codegen_flags: <defaults>
</compile_context>

<pallas_src>
import jax
import jax.numpy as jnp
from jax.experimental import pallas as pl
from jax.experimental.pallas import tpu as pltpu


def _sinusoidal_kernel(x_ref, a_ref, off_ref, o_ref):
    # x_ref: (tn, C)   a_ref: (C, D)   off_ref: (1, D)   o_ref: (tn, D)
    # phase[n, m] = x[n, j(m)] * f[k(m)]  (A has exactly one nonzero per column)
    phase = jnp.dot(
        x_ref[...],
        a_ref[...],
        precision=jax.lax.Precision.HIGHEST,   # exact f32; tiny K, MXU has slack
        preferred_element_type=jnp.float32,
    )
    # Single transcendental: cos(p) == sin(p + pi/2).  No select, half the EUP work.
    o_ref[...] = jnp.sin(phase + off_ref[...]).astype(o_ref.dtype)


def _pick_row_tile(n_rows, c, d, in_itemsize, out_itemsize,
                   budget_bytes=20 * 1024 * 1024):
    """Largest row tile whose double-buffered in+out tiles fit a VMEM budget
    that is safe on every generation (v7x: 64 MiB physical / 32 MiB scoped)."""
    per_row = 2 * (c * in_itemsize + d * out_itemsize)   # double-buffered tiles
    tn = budget_bytes // max(per_row, 1)
    tn = int(min(tn, 1024, n_rows))
    if tn < n_rows:
        tn = max(8, (tn // 8) * 8)   # second-to-last block dim: multiple of 8
    return max(int(tn), 1)


def make_sinusoidal_embedding(in_channels, num_frequencies=None,
                              embedding_type="transformer",
                              max_positions=10000, out_dtype=None):
    assert embedding_type in ("nerf", "transformer")
    C = int(in_channels)
    L = int(num_frequencies) if num_frequencies is not None else C
    D = 2 * L * C   # out_channels

    # --- deterministic "parameter" setup (frequencies are derived, not learned) ---
    if embedding_type == "nerf":
        freqs = (2.0 ** jnp.arange(L, dtype=jnp.float32)) * jnp.pi
    else:  # transformer
        exps = jnp.arange(L, dtype=jnp.float32) / (L * 2)
        freqs = (1.0 / max_positions) ** exps

    # A[j, m] = f[k] where m = j*(2L) + 2k + r (r in {0,1}), else 0.
    cols = jnp.arange(D)
    j_of_m = cols // (2 * L)
    k_of_m = (cols % (2 * L)) // 2
    A = jnp.zeros((C, D), dtype=jnp.float32).at[j_of_m, cols].set(freqs[k_of_m])
    # Phase offsets: 0 on sin slots (even m), pi/2 on cos slots (odd m).
    offsets = ((cols % 2).astype(jnp.float32) * (jnp.pi / 2))[None, :]   # (1, D)

    # NOTE: the kernel's stores are fully lane-dense (unmasked vst) whenever
    # D = 2*L*C is a multiple of 128; choosing such L*C is recommended for large
    # problems.  We do not physically pad D here because the post-call slice
    # would cost an extra full HBM read+write of the output.

    def forward(x):
        assert x.ndim in (2, 3), f"expected ndim 2 or 3, got {x.ndim}"
        batched = x.ndim == 3
        if not batched:
            x = x[None]
        B, N, Cx = x.shape
        assert Cx == C, f"expected {C} input channels, got {Cx}"

        odt = jnp.dtype(out_dtype) if out_dtype is not None else x.dtype
        tn = _pick_row_tile(N, C, D, jnp.dtype(x.dtype).itemsize, odt.itemsize)
        grid = (B, pl.cdiv(N, tn))

        out = pl.pallas_call(
            _sinusoidal_kernel,
            out_shape=jax.ShapeDtypeStruct((B, N, D), odt),
            grid_spec=pltpu.PrefetchScalarGridSpec(
                num_scalar_prefetch=0,
                grid=grid,
                in_specs=[
                    pl.BlockSpec((None, tn, C), lambda b, n: (b, n, 0)),
                    pl.BlockSpec((C, D), lambda b, n: (0, 0)),
                    pl.BlockSpec((1, D), lambda b, n: (0, 0)),
                ],
                out_specs=pl.BlockSpec((None, tn, D), lambda b, n: (b, n, 0)),
            ),
            compiler_params=pltpu.CompilerParams(
                dimension_semantics=("parallel", "parallel"),
                vmem_limit_bytes=40 * 1024 * 1024,
            ),
        )(x, A, offsets)

        if not batched:
            out = out[0]
        return out

    return forward, freqs, D


def _reference(x, freqs):
    # Pure-JAX transliteration of the PyTorch forward (for verification).
    batched = x.ndim == 3
    if not batched:
        x = x[None]
    B, N, _ = x.shape
    phase = jnp.einsum("bij,k->bijk", x, freqs)
    out = jnp.stack((jnp.sin(phase), jnp.cos(phase)), axis=-1).reshape(B, N, -1)
    if not batched:
        out = out[0]
    return out


if __name__ == "__main__":
    batch, n_in, in_channels, num_freqs = 2, 16, 4, 4

    key = jax.random.PRNGKey(0)
    x = jax.random.normal(key, (batch, n_in, in_channels), dtype=jnp.float32)

    # transformer-style embedding
    fwd, freqs, out_ch = make_sinusoidal_embedding(
        in_channels, num_frequencies=num_freqs,
        embedding_type="transformer", max_positions=10000)
    out = jax.block_until_ready(fwd(x))
    ref = _reference(x, freqs)
    assert out.shape == (batch, n_in, out_ch), out.shape
    assert jnp.allclose(out, ref, atol=1e-5, rtol=1e-5), float(
        jnp.max(jnp.abs(out - ref)))

    # unbatched (n_in, in_channels) path
    out2 = jax.block_until_ready(fwd(x[0]))
    assert out2.shape == (n_in, out_ch)
    assert jnp.allclose(out2, _reference(x[0], freqs), atol=1e-5, rtol=1e-5)

    # nerf-style embedding (NERF expects normalized coordinates -> small scale)
    x_nerf = x * 0.05
    fwd_nerf, freqs_nerf, _ = make_sinusoidal_embedding(
        in_channels, num_frequencies=num_freqs, embedding_type="nerf")
    out3 = jax.block_until_ready(fwd_nerf(x_nerf))
    assert jnp.allclose(out3, _reference(x_nerf, freqs_nerf),
                        atol=1e-5, rtol=1e-5)

    # optional bf16 output path (store-bound kernel: halves HBM writeback)
    fwd_bf16, _, _ = make_sinusoidal_embedding(
        in_channels, num_frequencies=num_freqs, out_dtype=jnp.bfloat16)
    out4 = jax.block_until_ready(fwd_bf16(x))
    assert out4.dtype == jnp.bfloat16
    assert jnp.allclose(out4.astype(jnp.float32), ref, atol=1e-2, rtol=1e-2)

    print("KERNEL_OK")
</pallas_src>

<mosaic_0001>
module attributes {stable_mosaic.version = 11 : i64} {
  func.func @_sinusoidal_kernel(%arg0: i32, %arg1: i32, %arg2: memref<1x16x4xf32, #tpu.memory_space<vmem>>, %arg3: memref<4x32xf32, #tpu.memory_space<vmem>>, %arg4: memref<1x32xf32, #tpu.memory_space<vmem>>, %arg5: memref<1x16x32xf32, #tpu.memory_space<vmem>>) attributes {dimension_semantics = [#tpu.dimension_semantics<parallel>, #tpu.dimension_semantics<parallel>], iteration_bounds = array<i64: 2, 1>, scalar_prefetch = 0 : i64, scratch_operands = 0 : i64, tpu.core_type = #tpu.core_type<tc>, window_params = [{transform_indices = @transform_0, window_bounds = array<i64: 1, 16, 4>}, {pipeline_mode = #tpu.pipeline_mode<synchronous>, transform_indices = @transform_1, window_bounds = array<i64: 4, 32>}, {pipeline_mode = #tpu.pipeline_mode<synchronous>, transform_indices = @transform_2, window_bounds = array<i64: 1, 32>}, {transform_indices = @transform_3, window_bounds = array<i64: 1, 16, 32>}]} {
    %c0 = arith.constant 0 : index
    %c0_0 = arith.constant 0 : index
    %c0_1 = arith.constant 0 : index
    %0 = vector.load %arg2[%c0, %c0_0, %c0_1] : memref<1x16x4xf32, #tpu.memory_space<vmem>>, vector<1x16x4xf32>
    %1 = vector.shape_cast %0 : vector<1x16x4xf32> to vector<16x4xf32>
    %c0_2 = arith.constant 0 : index
    %c0_3 = arith.constant 0 : index
    %2 = vector.load %arg3[%c0_2, %c0_3] : memref<4x32xf32, #tpu.memory_space<vmem>>, vector<4x32xf32>
    %cst = arith.constant dense<0.000000e+00> : vector<16x32xf32>
    %3 = tpu.matmul %1, %2, %cst {dimension_numbers = #tpu.dot_dimension_numbers<[1], [0], [0], [1], [0, 0, 1, 1], [], []>, precision = #tpu.contract_precision<fp32>} : vector<16x4xf32>, vector<4x32xf32>, vector<16x32xf32> -> vector<16x32xf32>
    %c0_4 = arith.constant 0 : index
    %c0_5 = arith.constant 0 : index
    %4 = vector.load %arg4[%c0_4, %c0_5] : memref<1x32xf32, #tpu.memory_space<vmem>>, vector<1x32xf32>
    %5 = vector.broadcast %4 : vector<1x32xf32> to vector<16x32xf32>
    %6 = arith.addf %3, %5 : vector<16x32xf32>
    %7 = math.sin %6 : vector<16x32xf32>
    %c0_6 = arith.constant 0 : index
    %c0_7 = arith.constant 0 : index
    %c0_8 = arith.constant 0 : index
    %8 = vector.load %arg5[%c0_6, %c0_7, %c0_8] : memref<1x16x32xf32, #tpu.memory_space<vmem>>, vector<1x16x32xf32>
    %9 = vector.shape_cast %8 : vector<1x16x32xf32> to vector<16x32xf32>
    %10 = vector.shape_cast %7 : vector<16x32xf32> to vector<1x16x32xf32>
    tpu.vector_store %arg5[%c0_6, %c0_7, %c0_8], %10 {strides = array<i32>} : memref<1x16x32xf32, #tpu.memory_space<vmem>>, vector<1x16x32xf32>,
    return
  }
  func.func @transform_0(%arg0: i32, %arg1: i32) -> (i32, i32, i32) {
    %c0_i32 = arith.constant 0 : i32
    %c0_i32_0 = arith.constant 0 : i32
    return %arg0, %arg1, %c0_i32 : i32, i32, i32
  }
  func.func @transform_1(%arg0: i32, %arg1: i32) -> (i32, i32) {
    %c0_i32 = arith.constant 0 : i32
    %c0_i32_0 = arith.constant 0 : i32
    %c0_i32_1 = arith.constant 0 : i32
    return %c0_i32, %c0_i32_0 : i32, i32
  }
  func.func @transform_2(%arg0: i32, %arg1: i32) -> (i32, i32) {
    %c0_i32 = arith.constant 0 : i32
    %c0_i32_0 = arith.constant 0 : i32
    %c0_i32_1 = arith.constant 0 : i32
    return %c0_i32, %c0_i32_0 : i32, i32
  }
  func.func @transform_3(%arg0: i32, %arg1: i32) -> (i32, i32, i32) {
    %c0_i32 = arith.constant 0 : i32
    %c0_i32_0 = arith.constant 0 : i32
    return %arg0, %arg1, %c0_i32 : i32, i32, i32
  }
}

</mosaic_0001>

<bundles_post_ra>
// kernel: tpu_custom_call.1
= control target key start
LH: loop header
LB: loop body
LE: loop exit
PB: predicated region body
PF: predicated region fallthrough
CT: control target
= control target key end

     0   :  { %8 = vsyncpa [#allocation3], 0  ;;  %s1469_s0 = inlined_call_operand.vmem [shape: f32[2,16,4], index: 0, kind: input, shape index: {}]   ;;  %s1470_s1 = inlined_call_operand.vmem [shape: f32[4,32], index: 1, kind: input, shape index: {}]   ;;  %s1471_s2 = inlined_call_operand.vmem [shape: f32[1,32], index: 2, kind: input, shape index: {}]   ;;  %s1472_s3 = inlined_call_operand.hbm [shape: f32[2,16,32], index: 3, kind: output, shape index: {}]  }
   0x1   :  { %10 = vsyncpa [#allocation3 + $0x1], 0  ;;  %s1274_s12 = smov 0   ;;  %s1276_s13 = smov 0  }
   0x2   :  { %s1278_s14 = smov 0   ;;  %s1280_s15 = smov 0  }
   0x3   :  { %s1282_s16 = smov 0   ;;  %s1284_s17 = smov 0  }
   0x4 LB: > { %s1016_s18 = sadd.s32 4294967295, %s1243_s17   ;;  %s1017_s19 = sadd.s32 4294967294, %s1243_s17   ;;  %s1243_s17 = sphi %s1284_s17, %s16_s17   ;;  %s1239_s16 = sphi %s1282_s16, %s1481_s16   ;;  %s1235_s15 = sphi %s1280_s15, %s1480_s15   ;;  %s1231_s14 = sphi %s1278_s14, %s1479_s14   ;;  %s1227_s13 = sphi %s1276_s13, %s1478_s13   ;;  %s1223_s12 = sphi %s1274_s12, %s1477_s12  }
   0x5   : > { %s28_s20 = sadd.s32 1, %s1239_s16  ;;  %s107_s21 = sadd.s32 1, %s1231_s14 }
   0x6   : > { %p30_p0 = scmp.ge.s32.totalorder %s28_s20, 2  ;;  %p117_p1 = scmp.ne.s32.totalorder %s1231_s14, %s1227_s13 }
   0x7   : > { %p118_p2 = scmp.eq.s32.totalorder %s1016_s18, 1  ;;  %p123_p3 = scmp.ne.s32.totalorder %s1227_s13, %s1223_s12 }
   0x8   : > { %s1483_s20 = smov (%p30_p0, %s28_s20), 0  ;;  %p124_p5 = scmp.eq.s32.totalorder %s1017_s19, 1 }
   0x9   : > { %p1314_p4 = por %p118_p2, %p117_p1  ;;  %s102_s23 = ssub.s32 %s1239_s16, %s1483_s20 }
   0xa   : > { %p1020_p6 = scmp.ge.s32.totalorder %s1243_s17, 1  ;;  %p105_p7 = scmp.eq.s32.totalorder %s102_s23, 0 }
   0xb   : > { %p1321_p8 = por %p124_p5, %p123_p3  ;;  %p161_p9 = scmp.lt.s32.totalorder %s1243_s17, 3 }
   0xc   : > { %s1327_s25 = scalar_select %p105_p7, %s1231_s14, %s107_s21  }
   0xd   : > { %p162_p10 = pnand %p1020_p6, %p161_p9 }
   0xe   : > { %p190_p11 = scmp.lt.s32.totalorder (!%p162_p10), %s1235_s15, 1  ;;  %s186_s8 = sand.u32 (!%p162_p10), 1, %s1227_s13  }
   0xf   : > { %165 = sbr.rel (%p162_p10) target bundleno = 348 (0x15c), region = 32  ;;  %s1021_s9 = sshll.u32 (!%p162_p10), %s186_s8, 4 }
  0x10   : > { %s188_s10 = scalar_lea.vmem (!%p162_p10), [#allocation2], %s1021_s9  ;;  %s1039_s11 = sshll.u32 (!%p162_p10), %s1235_s15, 8 }
  0x11   : > { %s937_s18 = sshll.u32 (!%p162_p10), %s188_s10, 4  ;;  %s1416_s23 = scalar_lea.hbm (!%p162_p10), %s1472_s3, %s1039_s11  ;;  %s1418_s18 = int_to_ptr.vmem [resolvable:$true] %s937_s18 }
  0x12   : > { %s1167_s26 = scalar_lea.vmem (!%p162_p10), %s1418_s18, 256  ;;  %s1251_s27 = smov (!%p162_p10), [#allocation2]  }
  0x13   : > { %p1168_p12 = scmp.ne.s32.totalorder (!%p162_p10), %s1418_s18, %s1167_s26 }
  0x14   : > { %v202_v0 = vld [vmem:[%s1470_s1] sm:$0xf]  ;;  %vm217_vm0 = vcmask 1043456   ;;  %s191_s28 = scalar_select %p190_p11, %s1235_s15, 1  ;;  %vm210_vm1 = vcmask 31744  }
  0x15   : > { %v219_v1 = vsel %vm217_vm0, %v202_v0, 0  ;;  %v1024_v23 = vld [vmem:[%s1471_s2] ss:$0 sm:$0xff]  ;;  %v1245_v0 = vmov 683565275   ;;  %s1424_s15 = scalar_lea.sflag [#allocation3], %s186_s8  ;;  %p1169_p13 = pnand %p1168_p12, %p1314_p4 }
  0x16   : > { %v252_v2 = vand.u32 4294901760, %v219_v1  ;;  %s1038_s29 = sshll.u32 %s191_s28, 4  ;;  %s1171_s28 = sshll.u32 %s1251_s27, 4  ;;  %s1172_s28 = int_to_ptr.vmem [resolvable:$false] %s1171_s28 }
  0x17   : > { %s197_s5 = scalar_lea.vmem %s1469_s0, %s1038_s29  ;;  %p1170_p0 = pneg %p1169_p13 }
  0x18   : > { %1058 = vmatprep.subr.mxu0 %v252_v2  ;;  %v339_v3 = vsub.f32 %v219_v1, %v252_v2  ;;  %v200_v5 = vld [vmem:[%s197_s5] sm:$0xff]  ;;  %v201_v6 = vld [vmem:[%s197_s5 + $0x8] sm:$0xff]  ;;  %s1173_s29 = scalar_lea.vmem %s1172_s28, 512  ;;  %p1174_p1 = scmp.lt.s32.totalorder %s1418_s18, %s1172_s28 }
  0x19   : > { %1059 = vmatpush3.msra.mxu0 %v252_v2  ;;  %v212_v7 = vsel %vm210_vm1, %v200_v5, 0  ;;  %v215_v8 = vsel %vm210_vm1, %v201_v6, 0  ;;  %v1247_v5 = vmov 2131351028   ;;  %p1175_p2 = scmp.lt.s32.totalorder %s1173_s29, %s1167_s26 }
  0x1a   : > { %v340_v4 = vand.u32 4294901760, %v339_v3  ;;  %1068 = vmatprep.subr.mxu0 %v339_v3  ;;  %v287_v10 = vand.u32 4294901760, %v212_v7  ;;  %v297_v11 = vand.u32 4294901760, %v215_v8 }
  0x1b   : > { %p1176_p3 = por %p1175_p2, %p1174_p1 }
  0x1c   : > { %v341_v9 = vsub.f32 %v339_v3, %v340_v4  ;;  %v288_v13 = vsub.f32 %v212_v7, %v287_v10  ;;  %1065 = vmatprep.mubr.f32.mxu1 %v287_v10  ;;  %v298_v14 = vsub.f32 %v215_v8, %v297_v11  ;;  %v1248_v7 = vmov 2102212464  }
  0x1d   : > { %p1177_p5 = pnand %p1176_p3, %p1170_p0 }
  0x1e   : > { %v342_v12 = vand.u32 4294901760, %v341_v9  ;;  %v289_v15 = vand.u32 4294901760, %v288_v13  ;;  %v299_v16 = vand.u32 4294901760, %v298_v14  ;;  %v1249_v9 = vmov 920167782  }
  0x20   : > { %1063 = vmatprep.subr.mxu1 %v342_v12  ;;  %v290_v17 = vsub.f32 %v288_v13, %v289_v15  ;;  %v300_v18 = vsub.f32 %v298_v14, %v299_v16 }
  0x21   : > { %1064 = vmatpush3.msra.mxu1 %v342_v12 }
  0x22   : > { %1066 = vmatmul.mubr.f32.vlgmr.msra.gmra.mxu1 %v297_v11  ;;  %1073 = vmatprep.subr.mxu1 %v252_v2  ;;  %v291_v19 = vand.u32 4294901760, %v290_v17  ;;  %v301_v20 = vand.u32 4294901760, %v300_v18 }
  0x23   : > { %1074 = vmatpush3.msra.mxu1 %v252_v2  ;;  %1075 = vmatprep.mubr.f32.mxu1 %v289_v15 }
  0x24   : > { %1083 = vmatprep.subr.mxu1 %v252_v2  ;;  %1060 = vmatprep.mubr.f32.mxu0 %v291_v19 }
  0x25   : > { %1061 = vmatmul.mubr.f32.vlgmr.msra.gmra.mxu0 %v301_v20 }
  0x26   : > { %1076 = vmatmul.mubr.f32.vlgmr.msra.gmra.mxu1 %v299_v16  ;;  %1069 = vmatpush3.msra.mxu0 %v339_v3  ;;  %v1246_v3 = vmov 2475754826   ;;  %v1250_v16 = vmov 1326507024  }
  0x27   : > { %1084 = vmatpush3.msra.mxu1 %v252_v2  ;;  %1070 = vmatprep.mubr.f32.mxu0 %v288_v13 }
  0x28   : > { %1078 = vmatprep.subr.mxu0 %v340_v4  ;;  %1085 = vmatprep.mubr.f32.mxu1 %v287_v10 }
  0x29   : > { %1071 = vmatmul.mubr.f32.vlgmr.msra.gmra.mxu0 %v298_v14 }
  0x2a   : > { %1086 = vmatmul.mubr.f32.vlgmr.msra.gmra.mxu1 %v297_v11  ;;  %1079 = vmatpush3.msra.mxu0 %v340_v4 }
  0x2b   : > { %1080 = vmatprep.mubr.f32.mxu0 %v287_v10 }
  0x2d   : > { %1081 = vmatmul.mubr.f32.vlgmr.msra.gmra.mxu0 %v297_v11 }
  0xe2   : > { %v1067_v21 = vpop.f32.mrf.mxu1 }
  0xe4   : > { %v379_v22 = vpop.f32.mrf.mxu1 }
  0xe5   : > { %v1062_v24 = vpop.f32.mrf.mxu0 }
  0xe6   : > { %v304_v25 = vadd.f32 %v1062_v24, %v1024_v23  ;;  %v1077_v26 = vpop.f32.mrf.mxu1 }
  0xe7   : > { %v293_v27 = vpop.f32.mrf.mxu0 }
  0xe8   : > { %v386_v28 = vadd.f32 %v1067_v21, %v304_v25  ;;  %v294_v29 = vadd.f32 %v1024_v23, %v293_v27  ;;  %v540_v33 = vpop.f32.mrf.mxu1 }
  0xe9   : > { %v1072_v30 = vpop.f32.mrf.mxu0 }
  0xea   : > { %v380_v31 = vadd.f32 %v379_v22, %v294_v29  ;;  %v467_v32 = vadd.f32 %v1072_v30, %v386_v28  ;;  %v1087_v40 = vpop.f32.mrf.mxu1 }
  0xeb   : > { %v459_v34 = vpop.f32.mrf.mxu0 }
  0xec   : > { %v549_v35 = vadd.f32 %v1077_v26, %v467_v32  ;;  %v460_v36 = vadd.f32 %v459_v34, %v380_v31  ;;  %v700_v46 = vpop.f32.mrf.mxu1 }
  0xed   : > { %v1082_v37 = vpop.f32.mrf.mxu0 }
  0xee   : > { %v541_v38 = vadd.f32 %v540_v33, %v460_v36  ;;  %v629_v39 = vadd.f32 %v1082_v37, %v549_v35 }
  0xef   : > { %v622_v41 = vpop.f32.mrf.mxu0 }
  0xf0   : > { %v1340_v42 = vadd.f32 %v1087_v40, %v629_v39  ;;  %v623_v43 = vadd.f32 %v622_v41, %v541_v38 }
  0xf2   : > { %v814_v44 = vand.u32 2147483647, %v1340_v42  ;;  %v817_v45 = vand.u32 2139095040, %v1340_v42  ;;  %v1344_v47 = vadd.f32 %v700_v46, %v623_v43  ;;  %vm816_vm0 = vcmp.lt.s32.totalorder %v1340_v42, 0 }
  0xf4   : > { %v818_v48 = vshrl.u32 %v817_v45, 23  ;;  %v821_v49 = vand.u32 8388607, %v814_v44  ;;  %v713_v50 = vand.u32 2139095040, %v1344_v47  ;;  %v710_v52 = vand.u32 2147483647, %v1344_v47 }
  0xf5   : > { %vm815_vm1 = vcmp.le.f32.partialorder %v814_v44, 0.7853982 }
  0xf6   : > { %v1029_v51 = vadd.s32 4294967169, %v818_v48  ;;  %v714_v53 = vshrl.u32 %v713_v50, 23  ;;  %v822_v55 = vor.u32 8388608, %v821_v49  ;;  %v717_v57 = vand.u32 8388607, %v710_v52 }
  0xf8   : > { %v824_v54 = vadd.s32 1, %v1029_v51  ;;  %v1025_v56 = vadd.s32 4294967169, %v714_v53  ;;  %v1352_v62 = vshll.u32 %v822_v55, 8  ;;  %v718_v2 = vor.u32 8388608, %v717_v57 }
  0xfa   : > { %vm825_vm2 = vcmp.gt.s32.totalorder %v824_v54, 0  ;;  %v720_v59 = vadd.s32 1, %v1025_v56  ;;  %v758_v35 = vshll.u32 %v718_v2, 8 }
  0xfb   : > { %v826_v58 = vsel %vm825_vm2, %v824_v54, 0  ;;  %vm712_vm2 = vcmp.lt.s32.totalorder %v1344_v47, 0 }
  0xfc   : > { %v827_v60 = vshrl.u32 %v826_v58, 5  ;;  %v828_v61 = vand.u32 31, %v826_v58  ;;  %vm721_vm3 = vcmp.gt.s32.totalorder %v720_v59, 0 }
  0xfd   : > { %v722_v21 = vsel %vm721_vm3, %v720_v59, 0  ;;  %vm1398_vm3 = vcmp.le.f32.partialorder %v710_v52, 0.7853982 }
  0xfe   : > { %v829_v63 = vsub.s32 32, %v828_v61  ;;  %v831_v1 = vshll.u32 %v1245_v0, %v828_v61  ;;  %v834_v4 = vshll.u32 %v1246_v3, %v828_v61  ;;  %v837_v6 = vshll.u32 %v1247_v5, %v828_v61 }
  0xff   : > { %v840_v8 = vshll.u32 %v1248_v7, %v828_v61  ;;  %v843_v10 = vshll.u32 %v1249_v9, %v828_v61  ;;  %vm846_vm4 = vcmp.lt.s32.totalorder %v827_v60, 1  ;;  %vm848_vm5 = vcmp.lt.s32.totalorder %v827_v60, 3 }
 0x100   : > { %v832_v11 = vshrl.u32 %v1246_v3, %v829_v63  ;;  %v835_v12 = vshrl.u32 %v1247_v5, %v829_v63  ;;  %v838_v13 = vshrl.u32 %v1248_v7, %v829_v63  ;;  %v830_v14 = vshrl.u32 %v1245_v0, %v829_v63 }
 0x101   : > { %v841_v15 = vshrl.u32 %v1249_v9, %v829_v63  ;;  %v844_v17 = vshrl.u32 %v1250_v16, %v829_v63  ;;  %vm849_vm6 = vcmp.lt.s32.totalorder %v827_v60, 4  ;;  %v724_v24 = vand.u32 31, %v722_v21 }
 0x102   : > { %v833_v18 = vor.u32 %v832_v11, %v831_v1  ;;  %v836_v19 = vor.u32 %v835_v12, %v834_v4  ;;  %v839_v20 = vor.u32 %v838_v13, %v837_v6  ;;  %vm847_vm7 = vcmp.lt.s32.totalorder %v827_v60, 2 }
 0x103   : > { %v842_v22 = vor.u32 %v841_v15, %v840_v8  ;;  %v845_v23 = vor.u32 %v844_v17, %v843_v10  ;;  %v725_v32 = vsub.s32 32, %v724_v24  ;;  %v723_v39 = vshrl.u32 %v722_v21, 5 }
 0x104   : > { %v850_v25 = vsel %vm846_vm4, %v830_v14, %v833_v18  ;;  %v851_v26 = vsel %vm849_vm6, %v839_v20, 2102212464  ;;  %v854_v27 = vsel %vm846_vm4, %v833_v18, %v836_v19  ;;  %v858_v28 = vsel %vm846_vm4, %v836_v19, %v839_v20 }
 0x105   : > { %v852_v29 = vsel %vm848_vm5, %v836_v19, %v851_v26  ;;  %v855_v30 = vsel %vm849_vm6, %v842_v22, 920167782  ;;  %v859_v31 = vsel %vm849_vm6, %v845_v23, 1326507024  ;;  %v727_v46 = vshll.u32 %v1245_v0, %v724_v24 }
 0x106   : > { %v856_v33 = vsel %vm848_vm5, %v839_v20, %v855_v30  ;;  %v860_v34 = vsel %vm848_vm5, %v842_v22, %v859_v31  ;;  %v853_v36 = vsel %vm847_vm7, %v850_v25, %v852_v29  ;;  %v728_v48 = vshrl.u32 %v1246_v3, %v725_v32 }
 0x107   : > { %v857_v37 = vsel %vm847_vm7, %v854_v27, %v856_v33  ;;  %v861_v38 = vsel %vm847_vm7, %v858_v28, %v860_v34  ;;  %v730_v49 = vshll.u32 %v1246_v3, %v724_v24  ;;  %v731_v50 = vshrl.u32 %v1247_v5, %v725_v32 }
 0x108   : > { %v1364_v40 = vmul.u32.u64.low %v1352_v62, %v861_v38  ;;  %v1365_v41 = vmul.u32.u64.high %v1352_v62, %v861_v38, %v1364_v40  ;;  %v1368_v43 = vmul.u32.u64.low %v1352_v62, %v857_v37  ;;  %v1369_v45 = vmul.u32.u64.high %v1352_v62, %v857_v37, %v1368_v43 }
 0x109   : > { %v733_v51 = vshll.u32 %v1247_v5, %v724_v24  ;;  %v734_v53 = vshrl.u32 %v1248_v7, %v725_v32  ;;  %v736_v54 = vshll.u32 %v1248_v7, %v724_v24  ;;  %v737_v55 = vshrl.u32 %v1249_v9, %v725_v32 }
 0x10a   : > { %v729_v56 = vor.u32 %v728_v48, %v727_v46  ;;  %v732_v57 = vor.u32 %v731_v50, %v730_v49  ;;  %v739_v58 = vshll.u32 %v1249_v9, %v724_v24  ;;  %v740_v59 = vshrl.u32 %v1250_v16, %v725_v32 }
 0x10b   : > { %v869_v60 = vmul.u32 %v1352_v62, %v853_v36  ;;  %vm871_vm8 = vc.u32 %v1365_v41, %v1368_v43  ;;  %v872_v61 = vadd.s32 1, %v1369_v45  ;;  %v735_v63 = vor.u32 %v734_v53, %v733_v51 }
 0x10c   : > { %v726_v1 = vshrl.u32 %v1245_v0, %v725_v32  ;;  %v738_v2 = vor.u32 %v737_v55, %v736_v54  ;;  %v741_v3 = vor.u32 %v740_v59, %v739_v58  ;;  %vm742_vm9 = vcmp.lt.s32.totalorder %v723_v39, 1 }
 0x10d   : > { %v873_v4 = vsel %vm871_vm8, %v872_v61, %v1369_v45  ;;  %vm744_vm10 = vcmp.lt.s32.totalorder %v723_v39, 3  ;;  %vm745_vm11 = vcmp.lt.s32.totalorder %v723_v39, 4  ;;  %v750_v5 = vsel %vm742_vm9, %v729_v56, %v732_v57 }
 0x10e   : > { %v874_v6 = vadd.s32 %v873_v4, %v869_v60  ;;  %v747_v7 = vsel %vm745_vm11, %v735_v63, 2102212464  ;;  %v751_v8 = vsel %vm745_vm11, %v738_v2, 920167782  ;;  %v754_v62 = vsel %vm742_vm9, %v732_v57, %v735_v63 }
 0x10f   : > { %vm743_vm12 = vcmp.lt.s32.totalorder %v723_v39, 2  ;;  %v746_v9 = vsel %vm742_vm9, %v726_v1, %v729_v56  ;;  %v752_v10 = vsel %vm744_vm10, %v735_v63, %v751_v8  ;;  %v755_v11 = vsel %vm745_vm11, %v741_v3, 1326507024 }
 0x110   : > { %v875_v12 = vadd.s32 536870912, %v874_v6  ;;  %v748_v13 = vsel %vm744_vm10, %v732_v57, %v747_v7  ;;  %v753_v14 = vsel %vm743_vm12, %v750_v5, %v752_v10  ;;  %v756_v0 = vsel %vm744_vm10, %v738_v2, %v755_v11 }
 0x111   : > { %v757_v15 = vsel %vm743_vm12, %v754_v62, %v756_v0  ;;  %v1379_v16 = vmul.u32.u64.low %v758_v35, %v753_v14  ;;  %v1380_v17 = vmul.u32.u64.high %v758_v35, %v753_v14, %v1379_v16  ;;  %v749_v21 = vsel %vm743_vm12, %v746_v9, %v748_v13 }
 0x112   : > { %v876_v18 = vshrl.u32 %v875_v12, 30  ;;  %v1382_v19 = vmul.u32.u64.low %v758_v35, %v757_v15  ;;  %v1383_v20 = vmul.u32.u64.high %v758_v35, %v757_v15, %v1382_v19  ;;  %v765_v25 = vmul.u32 %v758_v35, %v749_v21 }
 0x113   : > { %v768_v23 = vadd.s32 1, %v1380_v17  ;;  %v870_v38 = vadd.s32 %v1368_v43, %v1365_v41  ;;  %vm918_vm7 = vcmask 261120   ;;  %vm906_vm8 = vweird.f32 %v1340_v42 }
 0x114   : > { %v877_v22 = vshll.u32 %v876_v18, 30  ;;  %vm767_vm13 = vc.u32 %v1383_v20, %v1379_v16  ;;  %v766_v60 = vadd.s32 %v1379_v16, %v1383_v20  ;;  %v900_v3 = vsub.s32 4, %v876_v18 }
 0x115   : > { %v769_v26 = vsel %vm767_vm13, %v768_v23, %v1380_v17  ;;  %vm802_vm12 = vweird.f32 %v1344_v47 }
 0x116   : > { %v878_v24 = vsub.s32 %v874_v6, %v877_v22  ;;  %v770_v28 = vadd.s32 %v769_v26, %v765_v25  ;;  %v901_v62 = vsel %vm816_vm0, %v900_v3, %v876_v18 }
 0x117   : > { %v903_v11 = vsel %vm815_vm1, 0, %v901_v62 }
 0x118   : > { %v880_v27 = vsub.s32 0, %v878_v24  ;;  %v771_v30 = vadd.s32 536870912, %v770_v28  ;;  %v907_v14 = vadd.s32 3, %v903_v11 }
 0x11a   : > { %v1030_v29 = vmin.u32 %v880_v27, %v878_v24  ;;  %v772_v32 = vshrl.u32 %v771_v30, 30  ;;  %v908_v17 = vand.u32 3, %v907_v14 }
 0x11c   : > { %v882_v31 = vclz %v1030_v29  ;;  %v773_v34 = vshll.u32 %v772_v32, 30  ;;  %v796_v44 = vsub.s32 4, %v772_v32  ;;  %vm913_vm4 = vcmp.eq.s32.totalorder %v908_v17, 2 }
 0x11d   : > { %vm910_vm5 = vcmp.eq.s32.totalorder %v908_v17, 0  ;;  %vm909_vm6 = vcmp.lt.s32.totalorder %v908_v17, 2 }
 0x11e   : > { %v1031_v33 = vadd.s32 4294967294, %v882_v31  ;;  %v774_v36 = vsub.s32 %v770_v28, %v773_v34  ;;  %v797_v18 = vsel %vm712_vm2, %v796_v44, %v772_v32 }
 0x11f   : > { %v799_v21 = vsel %vm1398_vm3, 0, %v797_v18 }
 0x120   : > { %vm1032_vm14 = vcmp.lt.s32.totalorder %v1031_v33, 0  ;;  %v776_v40 = vsub.s32 0, %v774_v36 }
 0x121   : > { %v885_v37 = vsel %vm1032_vm14, 0, %v1031_v33 }
 0x122   : > { %v886_v39 = vsub.s32 32, %v885_v37  ;;  %v890_v35 = vsub.s32 4294967266, %v885_v37  ;;  %v887_v45 = vshll.u32 %v878_v24, %v885_v37  ;;  %v1026_v49 = vmin.u32 %v776_v40, %v774_v36 }
 0x123   : > { %v803_v24 = vadd.s32 3, %v799_v21 }
 0x124   : > { %v888_v46 = vshrl.u32 %v870_v38, %v886_v39  ;;  %v891_v48 = vadd.s32 127, %v890_v35  ;;  %v778_v53 = vclz %v1026_v49 }
 0x125   : > { %v804_v28 = vand.u32 3, %v803_v24 }
 0x126   : > { %v889_v50 = vor.u32 %v888_v46, %v887_v45  ;;  %v892_v51 = vshll.u32 %v891_v48, 23  ;;  %v1027_v55 = vadd.s32 4294967294, %v778_v53 }
 0x127   : > { %vm809_vm9 = vcmp.eq.s32.totalorder %v804_v28, 2  ;;  %vm806_vm10 = vcmp.eq.s32.totalorder %v804_v28, 0  ;;  %vm805_vm11 = vcmp.lt.s32.totalorder %v804_v28, 2 }
 0x128   : > { %v893_v54 = vor.u32 4788187, %v892_v51  ;;  %v896_v57 = vcvt.s32.f32 %v889_v50  ;;  %vm1028_vm15 = vcmp.lt.s32.totalorder %v1027_v55, 0 }
 0x129   : > { %v781_v58 = vsel %vm1028_vm15, 0, %v1027_v55 }
 0x12a   : > { %v894_v56 = vand.u32 2147483647, %v893_v54  ;;  %v782_v41 = vsub.s32 32, %v781_v58  ;;  %v786_v43 = vsub.s32 4294967266, %v781_v58  ;;  %v783_v63 = vshll.u32 %v774_v36, %v781_v58 }
 0x12c   : > { %v897_v59 = vmul.f32 %v896_v57, %v894_v56  ;;  %v784_v1 = vshrl.u32 %v766_v60, %v782_v41  ;;  %v787_v2 = vadd.s32 127, %v786_v43 }
 0x12e   : > { %v898_v61 = vxor.u32 2147483648, %v897_v59  ;;  %v785_v5 = vor.u32 %v784_v1, %v783_v63  ;;  %v788_v6 = vshll.u32 %v787_v2, 23 }
 0x130   : > { %v899_v4 = vsel %vm816_vm0, %v898_v61, %v897_v59  ;;  %v789_v8 = vor.u32 4788187, %v788_v6  ;;  %v792_v10 = vcvt.s32.f32 %v785_v5 }
 0x131   : > { %v902_v7 = vsel %vm815_vm1, %v1340_v42, %v899_v4 }
 0x132   : > { %1159 = vcosq.f32 %v902_v7  ;;  %v790_v9 = vand.u32 2147483647, %v789_v8 }
 0x133   : > { %1161 = vsinq.f32 %v902_v7 }
 0x134   : > { %v793_v12 = vmul.f32 %v792_v10, %v790_v9 }
 0x136   : > { %v794_v13 = vxor.u32 2147483648, %v793_v12 }
 0x138   : > { %v795_v15 = vsel %vm712_vm2, %v794_v13, %v793_v12 }
 0x139   : > { %v798_v16 = vsel %vm1398_vm3, %v1344_v47, %v795_v15 }
 0x13a   : > { %1163 = vcosq.f32 %v798_v16 }
 0x13b   : > { %1165 = vsinq.f32 %v798_v16 }
 0x13f   : > { %v1160_v19 = vpop.eup %1159 }
 0x140   : > { %v1162_v20 = vpop.eup %1161  ;;  %v914_v52 = vxor.u32 2147483648, %v1160_v19 }
 0x141   : > { %v911_v22 = vxor.u32 2147483648, %v1162_v20 }
 0x142   : > { %v915_v23 = vsel %vm913_vm4, %v914_v52, %v1162_v20 }
 0x143   : > { %v912_v25 = vsel %vm910_vm5, %v1160_v19, %v911_v22 }
 0x144   : > { %v916_v26 = vsel %vm909_vm6, %v912_v25, %v915_v23 }
 0x145   : > { %v917_v27 = vsel %vm906_vm8, nan, %v916_v26 }
 0x146   : > { %920 = vst.msk [vmem:[%s188_s10 + $0x8] sm:$0xff] %vm918_vm7, %v917_v27 }
 0x147   : > { %v1164_v29 = vpop.eup %1163 }
 0x148   : > { %v1166_v30 = vpop.eup %1165  ;;  %v810_v31 = vxor.u32 2147483648, %v1164_v29 }
 0x149   : > { %v807_v32 = vxor.u32 2147483648, %v1166_v30 }
 0x14a   : > { %v811_v33 = vsel %vm809_vm9, %v810_v31, %v1166_v30 }
 0x14b   : > { %v808_v34 = vsel %vm806_vm10, %v1164_v29, %v807_v32 }
 0x14c   : > { %v812_v42 = vsel %vm805_vm11, %v808_v34, %v811_v33 }
 0x14d   : > { %v813_v36 = vsel %vm802_vm12, nan, %v812_v42 }
 0x14e   : > { %919 = vst.msk [vmem:[%s188_s10] sm:$0xff] %vm918_vm7, %v813_v36 }
 0x14f   : > { %1180 = shalt.err (!%p1177_p5)
}
 0x150   : > { %s1181_s30 = scalar_lea.hbm %s1416_s23, 256  ;;  %s1185_s6 = scalar_lea.hbm %s1472_s3, 512 }
 0x151   : > { %p1182_p6 = scmp.ne.s32.totalorder %s1416_s23, %s1181_s30  ;;  %p1186_p10 = scmp.lt.s32.totalorder %s1416_s23, %s1472_s3 }
 0x152   : > { %p1187_p11 = scmp.lt.s32.totalorder %s1185_s6, %s1181_s30 }
 0x153   : > { %p1183_p7 = pnand %p1182_p6, %p1314_p4 }
 0x154   : > { %p1188_p12 = por %p1187_p11, %p1186_p10 }
 0x155   : > { %p1184_p9 = pneg %p1183_p7 }
 0x157   : > { %p1189_p13 = pnand %p1188_p12, %p1184_p9 }
 0x159   : > { %1192 = shalt.err (!%p1189_p13)
}
 0x15a   : > { %s1252_s9 = smov 128   ;;  %s1253_s10 = smov 8  }
 0x15b   : > { %1096 = dma.vmem_to_hbm [thread:$0]  (%p1314_p4), %s1418_s18, 256, %s1416_s23, %s1424_s15, %s1252_s9, %s1252_s9, %s1253_s10  }
 0x15c PF: > { %p1102_p0 = scmp.ge.s32.totalorder %s1243_s17, 2  ;;  %s952_s11 = sand.u32 1, %s1223_s12  }
 0x15d   : > { %s953_s19 = scalar_lea.sflag [#allocation3], %s952_s11 }
 0x15e   : > { %p1099_p1 = pnand %p1102_p0, %p1321_p8 }
 0x160   : > { %p1100_p2 = pneg %p1099_p1 }
 0x162   : > { %1218 = dma.done.wait (%p1100_p2), %s953_s19, 256  }
 0x163   : > { %1220 = vsyncadd (%p1100_p2), %s953_s19, 4294967040  ;;  %s16_s17 = sadd.s32 1, %s1243_s17   ;;  %s1477_s12 = smov %s1227_s13 }
 0x164   : > { %p13_p3 = scmp.ge.s32.totalorder %s16_s17, 4   ;;  %s1478_s13 = smov %s1231_s14 }
 0x165   : > { %s1479_s14 = smov %s1327_s25  ;;  %s1480_s15 = smov %s1239_s16 }
 0x166   : > { %s1481_s16 = smov %s1483_s20  ;;  %15 = sbr.rel (!%p13_p3) target bundleno = 4 (0x4), region = 67 }
 0x16b   :  { %958 = vsyncpa [#allocation3], 1 }
 0x16c   :  { %960 = vsyncpa [#allocation3 + $0x1], 1 }

</bundles_post_ra>
